<compile_context>
chip_gen: v5e
topology: v5e:2x2
jax: 0.10.0
libtpu: 0.0.40
codegen_flags: <defaults>
</compile_context>

<pallas_src>
import jax
import jax.numpy as jnp
from jax import lax
from jax.experimental import pallas as pl
from jax.experimental.pallas import tpu as pltpu


def _round_up(n, m):
    return ((n + m - 1) // m) * m


def _gelu_exact(x):
    # Matches torch.nn.GELU() default (exact erf form), computed in f32.
    return 0.5 * x * (1.0 + lax.erf(x * (1.0 / jnp.sqrt(2.0).astype(x.dtype))))


def mlp_kernel(x_ref, w1_ref, b1_ref, w2_ref, b2_ref, o_ref, acc_ref):
    # grid = (row tiles [parallel], hidden tiles [arbitrary / reduction, last axis])
    k = pl.program_id(1)

    @pl.when(k == 0)
    def _():
        acc_ref[...] = jnp.zeros_like(acc_ref)

    # First matmul for this hidden slab: bf16 operands, f32 accumulation on the MXU.
    h = jnp.dot(x_ref[...], w1_ref[...], preferred_element_type=jnp.float32)  # (TM, TH) f32
    h = _gelu_exact(h + b1_ref[...])                                          # bias + GELU in f32
    # dropout1: identity (eval mode)

    # Second matmul: accumulate this hidden slab's contribution into the f32 accumulator.
    acc_ref[...] += jnp.dot(h.astype(w2_ref.dtype), w2_ref[...],
                            preferred_element_type=jnp.float32)               # (TM, O_p)

    @pl.when(k == pl.num_programs(1) - 1)
    def _():
        y = _gelu_exact(acc_ref[...] + b2_ref[...])
        # dropout2: identity (eval mode)
        o_ref[...] = y.astype(o_ref.dtype)


def mlp_forward(x, w1, b1, w2, b2, *, tile_rows=256, tile_hidden=512):
    """x: (batch, patch, embed) float32. Returns (batch, patch, output_size) float32."""
    batch, patch, embed = x.shape
    hidden = w1.shape[1]
    out_dim = w2.shape[1]
    rows = batch * patch

    # Row tile: multiple of 16 (bf16 sublane packing), no larger than needed.
    TM = min(_round_up(tile_rows, 16), _round_up(rows, 16))
    # Hidden tile: multiple of 128 (lane-dense), no larger than the padded hidden dim.
    TH = min(_round_up(tile_hidden, 128), _round_up(hidden, 128))

    # Pad every matmul dimension to lane-dense (128-multiple) sizes; pad rows to TM.
    rows_p = _round_up(rows, TM)
    E_p = _round_up(embed, 128)
    H_p = _round_up(hidden, TH)
    O_p = _round_up(out_dim, 128)

    x2d = x.reshape(rows, embed)
    x2d = jnp.pad(x2d, ((0, rows_p - rows), (0, E_p - embed))).astype(jnp.bfloat16)
    w1_p = jnp.pad(w1, ((0, E_p - embed), (0, H_p - hidden))).astype(jnp.bfloat16)
    b1_p = jnp.pad(b1, (0, H_p - hidden)).reshape(1, H_p).astype(jnp.float32)
    w2_p = jnp.pad(w2, ((0, H_p - hidden), (0, O_p - out_dim))).astype(jnp.bfloat16)
    b2_p = jnp.pad(b2, (0, O_p - out_dim)).reshape(1, O_p).astype(jnp.float32)

    grid = (rows_p // TM, H_p // TH)

    # Explicit VMEM budget: double-buffered streamed tiles + f32 accumulator + margin.
    vmem_est = (2 * TM * E_p * 2      # x tile (bf16)
                + 2 * E_p * TH * 2    # W1 slab (bf16)
                + 2 * TH * 4          # b1 block
                + 2 * TH * O_p * 2    # W2 slab (bf16)
                + 2 * O_p * 4         # b2
                + 2 * TM * O_p * 4    # output tile (f32)
                + TM * O_p * 4)       # accumulator scratch
    vmem_limit = min(max(vmem_est + (8 << 20), 32 << 20), 64 << 20)

    out2d = pl.pallas_call(
        mlp_kernel,
        out_shape=jax.ShapeDtypeStruct((rows_p, O_p), jnp.float32),
        grid_spec=pltpu.PrefetchScalarGridSpec(
            num_scalar_prefetch=0,
            grid=grid,
            in_specs=[
                pl.BlockSpec((TM, E_p), lambda i, k: (i, 0)),   # x row tile
                pl.BlockSpec((E_p, TH), lambda i, k: (0, k)),   # W1 hidden slab
                pl.BlockSpec((1, TH), lambda i, k: (0, k)),     # b1 hidden slab
                pl.BlockSpec((TH, O_p), lambda i, k: (k, 0)),   # W2 hidden slab
                pl.BlockSpec((1, O_p), lambda i, k: (0, 0)),    # b2
            ],
            out_specs=pl.BlockSpec((TM, O_p), lambda i, k: (i, 0)),
            scratch_shapes=[pltpu.VMEM((TM, O_p), jnp.float32)],
        ),
        compiler_params=pltpu.CompilerParams(
            dimension_semantics=("parallel", "arbitrary"),
            vmem_limit_bytes=vmem_limit,
        ),
    )(x2d, w1_p, b1_p, w2_p, b2_p)

    return out2d[:rows, :out_dim].reshape(batch, patch, out_dim)


def init_params(key, embed, output_size):
    """Deterministic parameter init mimicking nn.Linear's uniform(-1/sqrt(in), 1/sqrt(in))."""
    hidden = embed * 2
    k1, k2, k3, k4 = jax.random.split(key, 4)
    lim1 = 1.0 / jnp.sqrt(embed)
    lim2 = 1.0 / jnp.sqrt(hidden)
    w1 = jax.random.uniform(k1, (embed, hidden), jnp.float32, -lim1, lim1)
    b1 = jax.random.uniform(k2, (hidden,), jnp.float32, -lim1, lim1)
    w2 = jax.random.uniform(k3, (hidden, output_size), jnp.float32, -lim2, lim2)
    b2 = jax.random.uniform(k4, (output_size,), jnp.float32, -lim2, lim2)
    return w1, b1, w2, b2


if __name__ == "__main__":
    # data_shape = (patch, embed) = (8, 32); output_size = 16; batch = 2
    batch, patch, embed, output_size = 2, 8, 32, 16

    key = jax.random.PRNGKey(0)
    kx, kp = jax.random.split(key)
    x = jax.random.normal(kx, (batch, patch, embed), jnp.float32)
    w1, b1, w2, b2 = init_params(kp, embed, output_size)

    out = mlp_forward(x, w1, b1, w2, b2)
    out = jax.block_until_ready(out)
    assert out.shape == (batch, patch, output_size)

    # Reference with matching bf16-operand / f32-accumulation math (tight check).
    def ref_bf16(x, w1, b1, w2, b2):
        h = jnp.dot(x.astype(jnp.bfloat16), w1.astype(jnp.bfloat16),
                    preferred_element_type=jnp.float32) + b1
        h = _gelu_exact(h)
        y = jnp.dot(h.astype(jnp.bfloat16), w2.astype(jnp.bfloat16),
                    preferred_element_type=jnp.float32) + b2
        return _gelu_exact(y)

    # Pure f32 reference (loose check documents bf16-MXU precision mode).
    def ref_f32(x, w1, b1, w2, b2):
        h = jax.nn.gelu(x @ w1 + b1, approximate=False)
        return jax.nn.gelu(h @ w2 + b2, approximate=False)

    exp_bf16 = ref_bf16(x.reshape(-1, embed), w1, b1, w2, b2).reshape(batch, patch, output_size)
    exp_f32 = ref_f32(x, w1, b1, w2, b2)

    assert jnp.allclose(out, exp_bf16, atol=1e-4, rtol=1e-4), \
        f"max |diff| vs bf16 ref = {jnp.max(jnp.abs(out - exp_bf16))}"
    assert jnp.allclose(out, exp_f32, atol=5e-2, rtol=5e-2), \
        f"max |diff| vs f32 ref = {jnp.max(jnp.abs(out - exp_f32))}"

    print("KERNEL_OK")
</pallas_src>

<mosaic_0001>
module attributes {stable_mosaic.version = 11 : i64} {
  func.func @mlp_kernel(%arg0: i32, %arg1: i32, %arg2: memref<16x128xbf16, #tpu.memory_space<vmem>>, %arg3: memref<128x128xbf16, #tpu.memory_space<vmem>>, %arg4: memref<1x128xf32, #tpu.memory_space<vmem>>, %arg5: memref<128x128xbf16, #tpu.memory_space<vmem>>, %arg6: memref<1x128xf32, #tpu.memory_space<vmem>>, %arg7: memref<16x128xf32, #tpu.memory_space<vmem>>, %arg8: memref<16x128xf32, #tpu.memory_space<vmem>>) attributes {dimension_semantics = [#tpu.dimension_semantics<parallel>, #tpu.dimension_semantics<arbitrary>], iteration_bounds = array<i64: 1, 1>, scalar_prefetch = 0 : i64, scratch_operands = 1 : i64, tpu.core_type = #tpu.core_type<tc>, window_params = [{transform_indices = @transform_0, window_bounds = array<i64: 16, 128>}, {transform_indices = @transform_1, window_bounds = array<i64: 128, 128>}, {transform_indices = @transform_2, window_bounds = array<i64: 1, 128>}, {transform_indices = @transform_3, window_bounds = array<i64: 128, 128>}, {pipeline_mode = #tpu.pipeline_mode<synchronous>, transform_indices = @transform_4, window_bounds = array<i64: 1, 128>}, {transform_indices = @transform_5, window_bounds = array<i64: 16, 128>}]} {
    %c0_i32 = arith.constant 0 : i32
    %0 = arith.cmpi eq, %arg1, %c0_i32 : i32
    %1 = arith.extui %0 : i1 to i32
    %c0_i32_0 = arith.constant 0 : i32
    %2 = arith.cmpi ne, %1, %c0_i32_0 : i32
    scf.if %2 {
      %cst_19 = arith.constant 0.000000e+00 : f32
      %28 = vector.broadcast %cst_19 : f32 to vector<16x128xf32>
      %c0_20 = arith.constant 0 : index
      %c0_21 = arith.constant 0 : index
      %29 = vector.load %arg8[%c0_20, %c0_21] : memref<16x128xf32, #tpu.memory_space<vmem>>, vector<16x128xf32>
      tpu.vector_store %arg8[%c0_20, %c0_21], %28 {strides = array<i32>} : memref<16x128xf32, #tpu.memory_space<vmem>>, vector<16x128xf32>,
    } else {
    }
    %c0 = arith.constant 0 : index
    %c0_1 = arith.constant 0 : index
    %3 = vector.load %arg2[%c0, %c0_1] : memref<16x128xbf16, #tpu.memory_space<vmem>>, vector<16x128xbf16>
    %c0_2 = arith.constant 0 : index
    %c0_3 = arith.constant 0 : index
    %4 = vector.load %arg3[%c0_2, %c0_3] : memref<128x128xbf16, #tpu.memory_space<vmem>>, vector<128x128xbf16>
    %cst = arith.constant dense<0.000000e+00> : vector<16x128xf32>
    %5 = tpu.matmul %3, %4, %cst {dimension_numbers = #tpu.dot_dimension_numbers<[1], [0], [0], [1], [0, 0, 1, 1], [], []>} : vector<16x128xbf16>, vector<128x128xbf16>, vector<16x128xf32> -> vector<16x128xf32>
    %c0_4 = arith.constant 0 : index
    %c0_5 = arith.constant 0 : index
    %6 = vector.load %arg4[%c0_4, %c0_5] : memref<1x128xf32, #tpu.memory_space<vmem>>, vector<1x128xf32>
    %7 = vector.broadcast %6 : vector<1x128xf32> to vector<16x128xf32>
    %8 = arith.addf %5, %7 : vector<16x128xf32>
    %cst_6 = arith.constant 5.000000e-01 : f32
    %9 = vector.broadcast %cst_6 : f32 to vector<16x128xf32>
    %10 = arith.mulf %9, %8 : vector<16x128xf32>
    %cst_7 = arith.constant 2.000000e+00 : f32
    %11 = math.sqrt %cst_7 : f32
    %cst_8 = arith.constant 1.000000e+00 : f32
    %12 = arith.divf %cst_8, %11 : f32
    %13 = vector.broadcast %12 : f32 to vector<16x128xf32>
    %14 = arith.mulf %8, %13 : vector<16x128xf32>
    %15 = math.erf %14 : vector<16x128xf32>
    %cst_9 = arith.constant 1.000000e+00 : f32
    %16 = vector.broadcast %cst_9 : f32 to vector<16x128xf32>
    %17 = arith.addf %16, %15 : vector<16x128xf32>
    %18 = arith.mulf %10, %17 : vector<16x128xf32>
    %c0_10 = arith.constant 0 : index
    %c0_11 = arith.constant 0 : index
    %19 = vector.load %arg8[%c0_10, %c0_11] : memref<16x128xf32, #tpu.memory_space<vmem>>, vector<16x128xf32>
    %20 = arith.truncf %18 : vector<16x128xf32> to vector<16x128xbf16>
    %c0_12 = arith.constant 0 : index
    %c0_13 = arith.constant 0 : index
    %21 = vector.load %arg5[%c0_12, %c0_13] : memref<128x128xbf16, #tpu.memory_space<vmem>>, vector<128x128xbf16>
    %cst_14 = arith.constant dense<0.000000e+00> : vector<16x128xf32>
    %22 = tpu.matmul %20, %21, %cst_14 {dimension_numbers = #tpu.dot_dimension_numbers<[1], [0], [0], [1], [0, 0, 1, 1], [], []>} : vector<16x128xbf16>, vector<128x128xbf16>, vector<16x128xf32> -> vector<16x128xf32>
    %23 = arith.addf %19, %22 : vector<16x128xf32>
    %c0_15 = arith.constant 0 : index
    %c0_16 = arith.constant 0 : index
    %24 = vector.load %arg8[%c0_15, %c0_16] : memref<16x128xf32, #tpu.memory_space<vmem>>, vector<16x128xf32>
    tpu.vector_store %arg8[%c0_15, %c0_16], %23 {strides = array<i32>} : memref<16x128xf32, #tpu.memory_space<vmem>>, vector<16x128xf32>,
    %c0_i32_17 = arith.constant 0 : i32
    %25 = arith.cmpi eq, %arg1, %c0_i32_17 : i32
    %26 = arith.extui %25 : i1 to i32
    %c0_i32_18 = arith.constant 0 : i32
    %27 = arith.cmpi ne, %26, %c0_i32_18 : i32
    scf.if %27 {
      %c0_19 = arith.constant 0 : index
      %c0_20 = arith.constant 0 : index
      %28 = vector.load %arg8[%c0_19, %c0_20] : memref<16x128xf32, #tpu.memory_space<vmem>>, vector<16x128xf32>
      %c0_21 = arith.constant 0 : index
      %c0_22 = arith.constant 0 : index
      %29 = vector.load %arg6[%c0_21, %c0_22] : memref<1x128xf32, #tpu.memory_space<vmem>>, vector<1x128xf32>
      %30 = vector.broadcast %29 : vector<1x128xf32> to vector<16x128xf32>
      %31 = arith.addf %28, %30 : vector<16x128xf32>
      %cst_23 = arith.constant 5.000000e-01 : f32
      %32 = vector.broadcast %cst_23 : f32 to vector<16x128xf32>
      %33 = arith.mulf %32, %31 : vector<16x128xf32>
      %cst_24 = arith.constant 2.000000e+00 : f32
      %34 = math.sqrt %cst_24 : f32
      %cst_25 = arith.constant 1.000000e+00 : f32
      %35 = arith.divf %cst_25, %34 : f32
      %36 = vector.broadcast %35 : f32 to vector<16x128xf32>
      %37 = arith.mulf %31, %36 : vector<16x128xf32>
      %38 = math.erf %37 : vector<16x128xf32>
      %cst_26 = arith.constant 1.000000e+00 : f32
      %39 = vector.broadcast %cst_26 : f32 to vector<16x128xf32>
      %40 = arith.addf %39, %38 : vector<16x128xf32>
      %41 = arith.mulf %33, %40 : vector<16x128xf32>
      %c0_27 = arith.constant 0 : index
      %c0_28 = arith.constant 0 : index
      %42 = vector.load %arg7[%c0_27, %c0_28] : memref<16x128xf32, #tpu.memory_space<vmem>>, vector<16x128xf32>
      tpu.vector_store %arg7[%c0_27, %c0_28], %41 {strides = array<i32>} : memref<16x128xf32, #tpu.memory_space<vmem>>, vector<16x128xf32>,
    } else {
    }
    return
  }
  func.func @transform_0(%arg0: i32, %arg1: i32) -> (i32, i32) {
    %c0_i32 = arith.constant 0 : i32
    %c0_i32_0 = arith.constant 0 : i32
    return %arg0, %c0_i32 : i32, i32
  }
  func.func @transform_1(%arg0: i32, %arg1: i32) -> (i32, i32) {
    %c0_i32 = arith.constant 0 : i32
    %c0_i32_0 = arith.constant 0 : i32
    return %c0_i32, %arg1 : i32, i32
  }
  func.func @transform_2(%arg0: i32, %arg1: i32) -> (i32, i32) {
    %c0_i32 = arith.constant 0 : i32
    %c0_i32_0 = arith.constant 0 : i32
    return %c0_i32, %arg1 : i32, i32
  }
  func.func @transform_3(%arg0: i32, %arg1: i32) -> (i32, i32) {
    %c0_i32 = arith.constant 0 : i32
    %c0_i32_0 = arith.constant 0 : i32
    return %arg1, %c0_i32 : i32, i32
  }
  func.func @transform_4(%arg0: i32, %arg1: i32) -> (i32, i32) {
    %c0_i32 = arith.constant 0 : i32
    %c0_i32_0 = arith.constant 0 : i32
    %c0_i32_1 = arith.constant 0 : i32
    return %c0_i32, %c0_i32_0 : i32, i32
  }
  func.func @transform_5(%arg0: i32, %arg1: i32) -> (i32, i32) {
    %c0_i32 = arith.constant 0 : i32
    %c0_i32_0 = arith.constant 0 : i32
    return %arg0, %c0_i32 : i32, i32
  }
}

</mosaic_0001>

<bundles_post_ra>
// kernel: tpu_custom_call.1
= control target key start
LH: loop header
LB: loop body
LE: loop exit
PB: predicated region body
PF: predicated region fallthrough
CT: control target
= control target key end

     0   :  { %10 = vsyncpa [#allocation4], 0  ;;  %s754_s0 = inlined_call_operand.hbm [shape: bf16[16,128], index: 0, kind: input, shape index: {}]   ;;  %s755_s1 = inlined_call_operand.hbm [shape: bf16[128,128], index: 1, kind: input, shape index: {}]   ;;  %s756_s2 = inlined_call_operand.vmem [shape: f32[1,128], index: 2, kind: input, shape index: {}]   ;;  %s757_s3 = inlined_call_operand.hbm [shape: bf16[128,128], index: 3, kind: input, shape index: {}]   ;;  %s758_s4 = inlined_call_operand.vmem [shape: f32[1,128], index: 4, kind: input, shape index: {}]   ;;  %s759_s5 = inlined_call_operand.hbm [shape: f32[16,128], index: 5, kind: output, shape index: {}]  }
   0x1   :  { %11 = vsyncpa [#allocation7], 0 }
   0x2   :  { %12 = vsyncpa [#allocation5], 0  ;;  %s30_s20 = sshll.u32 %s755_s1, 4  ;;  %s667_s21 = smov [#allocation6]   ;;  %s31_s20 = int_to_ptr.hbm [resolvable:$true] %s30_s20 }
   0x3   :  { %s32_s22 = sshll.u32 %s667_s21, 4  ;;  %s17_s25 = sshll.u32 %s754_s0, 4  ;;  %s33_s22 = int_to_ptr.vmem [resolvable:$true] %s32_s22  ;;  %s18_s25 = int_to_ptr.hbm [resolvable:$true] %s17_s25 }
   0x4   :  { %s668_s26 = smov 64   ;;  %s669_s27 = smov 4  }
   0x5   :  { %38 = dma.hbm_to_vmem [thread:$0]  %s31_s20, 1024, %s33_s22, [#allocation7], %s668_s26, %s668_s26, %s669_s27  }
   0x6   :  { %s670_s28 = smov [#allocation3]   ;;  %s45_s7 = sshll.u32 %s757_s3, 4  ;;  %s46_s7 = int_to_ptr.hbm [resolvable:$true] %s45_s7 }
   0x7   :  { %s19_s29 = sshll.u32 %s670_s28, 4  ;;  %s671_s1 = smov [#allocation8]   ;;  %s20_s29 = int_to_ptr.vmem [resolvable:$true] %s19_s29 }
   0x8   :  { %25 = dma.hbm_to_vmem [thread:$0]  %s18_s25, 128, %s20_s29, [#allocation4], %s668_s26, %s668_s26, %s669_s27  }
   0x9   :  { %s47_s8 = sshll.u32 %s671_s1, 4  ;;  %s48_s8 = int_to_ptr.vmem [resolvable:$true] %s47_s8 }
   0xa   :  { %53 = dma.hbm_to_vmem [thread:$0]  %s46_s7, 1024, %s48_s8, [#allocation7], %s668_s26, %s668_s26, %s669_s27  }
   0xb   :  { %661 = dma.done.wait [#allocation4], 128  }
   0xc   :  { %662 = vsyncadd [#allocation4], 4294967168 }
   0xd   :  { %663 = dma.done.wait [#allocation7], 2048  }
   0xe   :  { %664 = vsyncadd [#allocation7], 4294965248  ;;  %v538_v0 = vld [vmem:[#allocation6 + $0x38] sm:$0xff]  ;;  %v537_v1 = vld [vmem:[#allocation6 + $0x30] sm:$0xff]  ;;  %s444_s13 = sshll.u32 %s759_s5, 4  ;;  %s673_s14 = smov 128   ;;  %s445_s13 = int_to_ptr.hbm [resolvable:$true] %s444_s13 }
   0xf   :  { %150 = vmatpush.bf16.msra.mxu0 %v538_v0  ;;  %v536_v2 = vld [vmem:[#allocation6 + $0x28] sm:$0xff]  ;;  %v535_v3 = vld [vmem:[#allocation6 + $0x20] sm:$0xff]  ;;  %v534_v4 = vld [vmem:[#allocation6 + $0x18] sm:$0xff]  ;;  %s674_s15 = smov 8  }
  0x10   :  { %v533_v5 = vld [vmem:[#allocation6 + $0x10] sm:$0xff]  ;;  %v532_v6 = vld [vmem:[#allocation6 + $0x8] sm:$0xff]  ;;  %v531_v7 = vld [vmem:[#allocation6] sm:$0xff] }
  0x11   :  { %v530_v8 = vld [vmem:[#allocation3] sm:$0xff]  ;;  %v545_v14 = vld [vmem:[#allocation8 + $0x30] sm:$0xff]  ;;  %v544_v16 = vld [vmem:[#allocation8 + $0x28] sm:$0xff] }
  0x12   :  { %v555_v9 = vld [vmem:[%s756_s2] ss:$0 sm:$0xff]  ;;  %v543_v21 = vld [vmem:[#allocation8 + $0x20] sm:$0xff]  ;;  %v541_v33 = vld [vmem:[#allocation8 + $0x10] sm:$0xff] }
  0x13   :  { %151 = vmatpush.bf16.msra.mxu0 %v537_v1  ;;  %v546_v10 = vld [vmem:[#allocation8 + $0x38] sm:$0xff]  ;;  %v540_v41 = vld [vmem:[#allocation8 + $0x8] sm:$0xff]  ;;  %v539_v48 = vld [vmem:[#allocation8] sm:$0xff] }
  0x14   :  { %319 = vmatpush.bf16.msra.mxu1 %v546_v10  ;;  %v542_v27 = vld [vmem:[#allocation8 + $0x18] sm:$0xff] }
  0x17   :  { %152 = vmatpush.bf16.msra.mxu0 %v536_v2 }
  0x18   :  { %320 = vmatpush.bf16.msra.mxu1 %v545_v14 }
  0x1b   :  { %153 = vmatpush.bf16.msra.mxu0 %v535_v3 }
  0x1c   :  { %321 = vmatpush.bf16.msra.mxu1 %v544_v16 }
  0x1f   :  { %154 = vmatpush.bf16.msra.mxu0 %v534_v4 }
  0x20   :  { %322 = vmatpush.bf16.msra.mxu1 %v543_v21 }
  0x23   :  { %155 = vmatpush.bf16.msra.mxu0 %v533_v5 }
  0x24   :  { %323 = vmatpush.bf16.msra.mxu1 %v542_v27 }
  0x27   :  { %156 = vmatpush.bf16.msra.mxu0 %v532_v6 }
  0x28   :  { %324 = vmatpush.bf16.msra.mxu1 %v541_v33 }
  0x2b   :  { %157 = vmatpush.bf16.msra.mxu0 %v531_v7 }
  0x2c   :  { %325 = vmatpush.bf16.msra.mxu1 %v540_v41 }
  0x2e   :  { %158 = vmatmul.bf16.vlgmr.msra.gmra.mxu0 %v530_v8 }
  0x30   :  { %326 = vmatpush.bf16.msra.mxu1 %v539_v48 }
  0xab   :  { %v159_v11 = vpop.f32.mrf.mxu0 }
  0xac   :  { %v717_v12 = vadd.f32 %v555_v9, %v159_v11 }
  0xae   :  { %v720_v13 = vmul.f32 0.70710677, %v717_v12 }
  0xb0   :  { %v168_v15 = vmul.f32 %v720_v13, %v720_v13 }
  0xb2   :  { %v169_v17 = vmin.f32 %v168_v15, 16.0 }
  0xb3   :  { %v161_v18 = vpop.f32.mrf.mxu0 }
  0xb4   :  { %v170_v19 = vmul.f32 2.1237322e-06, %v169_v17  ;;  %v724_v20 = vadd.f32 %v555_v9, %v161_v18  ;;  %v181_v22 = vmul.f32 3.8918573e-05, %v169_v17 }
  0xb6   :  { %v171_v23 = vadd.f32 0.00028619796, %v170_v19  ;;  %v727_v24 = vmul.f32 0.70710677, %v724_v20  ;;  %v182_v25 = vadd.f32 0.001143296, %v181_v22 }
  0xb8   :  { %v208_v26 = vmul.f32 %v727_v24, %v727_v24  ;;  %v172_v28 = vmul.f32 %v171_v23, %v169_v17  ;;  %v183_v29 = vmul.f32 %v182_v25, %v169_v17 }
  0xba   :  { %v209_v30 = vmin.f32 %v208_v26, 16.0  ;;  %v184_v31 = vadd.f32 0.014752088, %v183_v29  ;;  %v173_v35 = vadd.f32 0.0036580483, %v172_v28 }
  0xbc   :  { %v210_v32 = vmul.f32 2.1237322e-06, %v209_v30  ;;  %v221_v34 = vmul.f32 3.8918573e-05, %v209_v30  ;;  %v185_v36 = vmul.f32 %v184_v31, %v169_v17  ;;  %v174_v43 = vmul.f32 %v173_v35, %v169_v17 }
  0xbd   :  { %v165_v35 = vmul.f32 0.5, %v724_v20 }
  0xbe   :  { %v211_v37 = vadd.f32 0.00028619796, %v210_v32  ;;  %v222_v38 = vadd.f32 0.001143296, %v221_v34  ;;  %v186_v39 = vadd.f32 0.112945676, %v185_v36 }
  0xbf   :  { %v175_v50 = vadd.f32 0.05243302, %v174_v43  ;;  %v164_v34 = vmul.f32 0.5, %v717_v12 }
  0xc0   :  { %v212_v40 = vmul.f32 %v211_v37, %v209_v30  ;;  %v223_v42 = vmul.f32 %v222_v38, %v209_v30  ;;  %v187_v44 = vmul.f32 %v186_v39, %v169_v17 }
  0xc1   :  { %v176_v56 = vmul.f32 %v175_v50, %v169_v17 }
  0xc2   :  { %v213_v45 = vadd.f32 0.0036580483, %v212_v40  ;;  %v224_v46 = vadd.f32 0.014752088, %v223_v42  ;;  %v188_v47 = vadd.f32 0.4994258, %v187_v44 }
  0xc3   :  { %v177_v60 = vadd.f32 0.18741608, %v176_v56 }
  0xc4   :  { %v225_v49 = vmul.f32 %v224_v46, %v209_v30  ;;  %v189_v51 = vmul.f32 %v188_v47, %v169_v17  ;;  %v214_v52 = vmul.f32 %v213_v45, %v209_v30 }
  0xc5   :  { %v178_v1 = vmul.f32 %v177_v60, %v169_v17 }
  0xc6   :  { %v226_v53 = vadd.f32 0.112945676, %v225_v49  ;;  %v190_v54 = vadd.f32 1.0, %v189_v51  ;;  %v215_v57 = vadd.f32 0.05243302, %v214_v52 }
  0xc7   :  { %v179_v7 = vadd.f32 1.1283791, %v178_v1 }
  0xc8   :  { %v227_v55 = vmul.f32 %v226_v53, %v209_v30  ;;  %557 = vrcp.f32 %v190_v54  ;;  %v216_v61 = vmul.f32 %v215_v57, %v209_v30  ;;  %v202_v4 = vand.u32 2147483648, %v190_v54 }
  0xc9   :  { %v200_v6 = vand.u32 2147483647, %v190_v54  ;;  %vm196_vm1 = vweird.f32 %v190_v54  ;;  %v180_v16 = vmul.f32 %v179_v7, %v720_v13 }
  0xca   :  { %v228_v58 = vadd.f32 0.4994258, %v227_v55  ;;  %v217_v2 = vadd.f32 0.18741608, %v216_v61  ;;  %v203_v11 = vor.u32 1.1754944e-38, %v202_v4 }
  0xcb   :  { %vm201_vm3 = vcmp.eq.f32.partialorder %v200_v6, 8.507059e+37 }
  0xcc   :  { %v229_v59 = vmul.f32 %v228_v58, %v209_v30  ;;  %v218_v9 = vmul.f32 %v217_v2, %v209_v30 }
  0xce   :  { %v230_v62 = vadd.f32 1.0, %v229_v59  ;;  %v558_v63 = vpop.eup %557  ;;  %v219_v19 = vadd.f32 1.1283791, %v218_v9 }
  0xcf   :  { %v192_v0 = vmul.f32 %v558_v63, %v190_v54  ;;  %vm197_vm0 = vweird.f32 %v558_v63 }
  0xd0   :  { %559 = vrcp.f32 %v230_v62  ;;  %vm198_vm2 = vmor %vm196_vm1, %vm197_vm0  ;;  %v242_v21 = vand.u32 2147483648, %v230_v62  ;;  %v240_v25 = vand.u32 2147483647, %v230_v62  ;;  %vm236_vm5 = vweird.f32 %v230_v62 }
  0xd1   :  { %v193_v3 = vsub.f32 1.0, %v192_v0  ;;  %v220_v28 = vmul.f32 %v219_v19, %v727_v24  ;;  %v556_v24 = vld [vmem:[%s758_s4] ss:$0 sm:$0xff]  ;;  %s672_s4 = smov [#allocation9]  }
  0xd2   :  { %v243_v27 = vor.u32 1.1754944e-38, %v242_v21  ;;  %vm241_vm7 = vcmp.eq.f32.partialorder %v240_v25, 8.507059e+37  ;;  %s442_s10 = sshll.u32 %s672_s4, 4  ;;  %s443_s10 = int_to_ptr.vmem [resolvable:$true] %s442_s10 }
  0xd3   :  { %v194_v5 = vmul.f32 %v558_v63, %v193_v3 }
  0xd5   :  { %v195_v10 = vadd.f32 %v558_v63, %v194_v5 }
  0xd6   :  { %v560_v8 = vpop.eup %559 }
  0xd7   :  { %v232_v14 = vmul.f32 %v560_v8, %v230_v62  ;;  %v199_v15 = vsel %vm198_vm2, %v558_v63, %v195_v10  ;;  %vm237_vm4 = vweird.f32 %v560_v8 }
  0xd8   :  { %v204_v18 = vsel %vm201_vm3, %v203_v11, %v199_v15  ;;  %vm238_vm6 = vmor %vm236_vm5, %vm237_vm4 }
  0xd9   :  { %v233_v17 = vsub.f32 1.0, %v232_v14  ;;  %v205_v22 = vmul.f32 %v204_v18, %v180_v16 }
  0xdb   :  { %v234_v23 = vmul.f32 %v560_v8, %v233_v17  ;;  %v494_v29 = vclamps-f32 %v205_v22, 1.0 }
  0xdd   :  { %v235_v26 = vadd.f32 %v560_v8, %v234_v23  ;;  %v248_v33 = vadd.f32 1.0, %v494_v29 }
  0xdf   :  { %v239_v30 = vsel %vm238_vm6, %v560_v8, %v235_v26  ;;  %v250_v37 = vmul.f32 %v248_v33, %v164_v34 }
  0xe0   :  { %v244_v31 = vsel %vm241_vm7, %v243_v27, %v239_v30 }
  0xe1   :  { %v245_v32 = vmul.f32 %v244_v31, %v220_v28 }
  0xe3   :  { %v495_v13 = vclamps-f32 %v245_v32, 1.0 }
  0xe5   :  { %v249_v36 = vadd.f32 1.0, %v495_v13 }
  0xe7   :  { %v251_v38 = vmul.f32 %v249_v36, %v165_v35 }
  0xe9   :  { %v254_v39 = vpack.c.bf16 %v251_v38, %v250_v37 }
  0xeb   :  { %327 = vmatmul.bf16.vlgmr.msra.gmra.mxu1 %v254_v39 }
 0x168   :  { %v328_v40 = vpop.f32.mrf.mxu1 }
 0x169   :  { %v738_v41 = vadd.f32 %v556_v24, %v328_v40 }
 0x16b   :  { %v350_v42 = vmul.f32 0.70710677, %v738_v41 }
 0x16d   :  { %v352_v43 = vmul.f32 %v350_v42, %v350_v42 }
 0x16f   :  { %v353_v44 = vmin.f32 %v352_v43, 16.0 }
 0x170   :  { %v330_v45 = vpop.f32.mrf.mxu1 }
 0x171   :  { %v354_v12 = vmul.f32 2.1237322e-06, %v353_v44  ;;  %v365_v46 = vmul.f32 3.8918573e-05, %v353_v44  ;;  %v741_v20 = vadd.f32 %v556_v24, %v330_v45 }
 0x173   :  { %v355_v47 = vadd.f32 0.00028619796, %v354_v12  ;;  %v366_v48 = vadd.f32 0.001143296, %v365_v46  ;;  %v744_v49 = vmul.f32 0.70710677, %v741_v20 }
 0x174   :  { %v348_v46 = vmul.f32 0.5, %v738_v41  ;;  %v349_v41 = vmul.f32 0.5, %v741_v20 }
 0x175   :  { %v356_v50 = vmul.f32 %v355_v47, %v353_v44  ;;  %v367_v51 = vmul.f32 %v366_v48, %v353_v44  ;;  %v392_v52 = vmul.f32 %v744_v49, %v744_v49 }
 0x177   :  { %v368_v53 = vadd.f32 0.014752088, %v367_v51  ;;  %v357_v54 = vadd.f32 0.0036580483, %v356_v50  ;;  %v393_v55 = vmin.f32 %v392_v52, 16.0 }
 0x179   :  { %v369_v56 = vmul.f32 %v368_v53, %v353_v44  ;;  %v394_v57 = vmul.f32 2.1237322e-06, %v393_v55  ;;  %v405_v58 = vmul.f32 3.8918573e-05, %v393_v55  ;;  %v358_v60 = vmul.f32 %v357_v54, %v353_v44 }
 0x17b   :  { %v370_v59 = vadd.f32 0.112945676, %v369_v56  ;;  %v395_v61 = vadd.f32 0.00028619796, %v394_v57  ;;  %v406_v62 = vadd.f32 0.001143296, %v405_v58 }
 0x17c   :  { %v359_v3 = vadd.f32 0.05243302, %v358_v60 }
 0x17d   :  { %v371_v63 = vmul.f32 %v370_v59, %v353_v44  ;;  %v396_v0 = vmul.f32 %v395_v61, %v393_v55  ;;  %v407_v1 = vmul.f32 %v406_v62, %v393_v55 }
 0x17e   :  { %v360_v9 = vmul.f32 %v359_v3, %v353_v44 }
 0x17f   :  { %v372_v2 = vadd.f32 0.4994258, %v371_v63  ;;  %v408_v4 = vadd.f32 0.014752088, %v407_v1  ;;  %v397_v6 = vadd.f32 0.0036580483, %v396_v0 }
 0x180   :  { %v361_v15 = vadd.f32 0.18741608, %v360_v9 }
 0x181   :  { %v373_v5 = vmul.f32 %v372_v2, %v353_v44  ;;  %v409_v7 = vmul.f32 %v408_v4, %v393_v55  ;;  %v398_v11 = vmul.f32 %v397_v6, %v393_v55 }
 0x182   :  { %v362_v21 = vmul.f32 %v361_v15, %v353_v44 }
 0x183   :  { %v374_v8 = vadd.f32 1.0, %v373_v5  ;;  %v410_v10 = vadd.f32 0.112945676, %v409_v7  ;;  %v399_v18 = vadd.f32 0.05243302, %v398_v11 }
 0x184   :  { %v363_v28 = vadd.f32 1.1283791, %v362_v21 }
 0x185   :  { %561 = vrcp.f32 %v374_v8  ;;  %v411_v14 = vmul.f32 %v410_v10, %v393_v55  ;;  %v400_v25 = vmul.f32 %v399_v18, %v393_v55  ;;  %v386_v27 = vand.u32 2147483648, %v374_v8 }
 0x186   :  { %v384_v30 = vand.u32 2147483647, %v374_v8  ;;  %vm380_vm9 = vweird.f32 %v374_v8  ;;  %v364_v34 = vmul.f32 %v363_v28, %v350_v42 }
 0x187   :  { %v412_v16 = vadd.f32 0.4994258, %v411_v14  ;;  %v401_v31 = vadd.f32 0.18741608, %v400_v25  ;;  %v387_v13 = vor.u32 1.1754944e-38, %v386_v27 }
 0x188   :  { %vm385_vm11 = vcmp.eq.f32.partialorder %v384_v30, 8.507059e+37 }
 0x189   :  { %v413_v17 = vmul.f32 %v412_v16, %v393_v55  ;;  %v402_v37 = vmul.f32 %v401_v31, %v393_v55 }
 0x18b   :  { %v562_v19 = vpop.eup %561  ;;  %v414_v23 = vadd.f32 1.0, %v413_v17  ;;  %v403_v44 = vadd.f32 1.1283791, %v402_v37 }
 0x18c   :  { %v376_v22 = vmul.f32 %v562_v19, %v374_v8  ;;  %vm381_vm8 = vweird.f32 %v562_v19 }
 0x18d   :  { %563 = vrcp.f32 %v414_v23  ;;  %vm382_vm10 = vmor %vm380_vm9, %vm381_vm8  ;;  %v426_v43 = vand.u32 2147483648, %v414_v23  ;;  %v424_v12 = vand.u32 2147483647, %v414_v23  ;;  %vm420_vm13 = vweird.f32 %v414_v23 }
 0x18e   :  { %v377_v26 = vsub.f32 1.0, %v376_v22  ;;  %v404_v51 = vmul.f32 %v403_v44, %v744_v49 }
 0x18f   :  { %v427_v42 = vor.u32 1.1754944e-38, %v426_v43  ;;  %vm425_vm15 = vcmp.eq.f32.partialorder %v424_v12, 8.507059e+37 }
 0x190   :  { %v378_v29 = vmul.f32 %v562_v19, %v377_v26 }
 0x192   :  { %v379_v32 = vadd.f32 %v562_v19, %v378_v29 }
 0x193   :  { %v564_v33 = vpop.eup %563 }
 0x194   :  { %v383_v35 = vsel %vm382_vm10, %v562_v19, %v379_v32  ;;  %v416_v38 = vmul.f32 %v564_v33, %v414_v23  ;;  %vm421_vm12 = vweird.f32 %v564_v33 }
 0x195   :  { %v388_v36 = vsel %vm385_vm11, %v387_v13, %v383_v35  ;;  %vm422_vm14 = vmor %vm420_vm13, %vm421_vm12 }
 0x196   :  { %v389_v39 = vmul.f32 %v388_v36, %v364_v34  ;;  %v417_v24 = vsub.f32 1.0, %v416_v38 }
 0x198   :  { %v528_v40 = vclamps-f32 %v389_v39, 1.0  ;;  %v418_v45 = vmul.f32 %v564_v33, %v417_v24 }
 0x19a   :  { %v432_v47 = vadd.f32 1.0, %v528_v40  ;;  %v419_v48 = vadd.f32 %v564_v33, %v418_v45 }
 0x19c   :  { %v434_v50 = vmul.f32 %v432_v47, %v348_v46  ;;  %v423_v52 = vsel %vm422_vm14, %v564_v33, %v419_v48 }
 0x19d   :  { %v428_v53 = vsel %vm425_vm15, %v427_v42, %v423_v52 }
 0x19e   :  { %436 = vst [vmem:[#allocation9] sm:$0xff] %v434_v50  ;;  %v429_v54 = vmul.f32 %v428_v53, %v404_v51 }
 0x1a0   :  { %v529_v55 = vclamps-f32 %v429_v54, 1.0 }
 0x1a2   :  { %v433_v56 = vadd.f32 1.0, %v529_v55 }
 0x1a4   :  { %v435_v57 = vmul.f32 %v433_v56, %v349_v41 }
 0x1a6   :  { %437 = vst [vmem:[#allocation9 + $0x8] sm:$0xff] %v435_v57 }
 0x1a7   :  { %450 = dma.vmem_to_hbm [thread:$0]  %s443_s10, 256, %s445_s13, [#allocation5], %s673_s14, %s673_s14, %s674_s15  }
 0x1a8   :  { %665 = dma.done.wait [#allocation5], 256  }
 0x1a9   :  { %666 = vsyncadd [#allocation5], 4294967040 }
 0x1aa   :  { %455 = vsyncpa [#allocation4], 1 }
 0x1ab   :  { %456 = vsyncpa [#allocation7], 1 }
 0x1ac   :  { %457 = vsyncpa [#allocation5], 1 }

</bundles_post_ra>
